<compile_context>
chip_gen: v5e
topology: v5e:2x2
jax: 0.10.0
libtpu: 0.0.40
codegen_flags: <defaults>
</compile_context>

<pallas_src>
import jax
import jax.numpy as jnp
from jax.experimental import pallas as pl
from jax.experimental.pallas import tpu as pltpu

_LANE = 128
_TARGET_BLOCK_ELEMS = 512 * 1024          # ~2 MiB of int32 per block


def _dequant_kernel(m0_ref, x_ref, o_ref):
    # m0_ref: SMEM int32[1]; x_ref / o_ref: VMEM int32 tiles.
    o_ref[...] = (x_ref[...] * m0_ref[0]) << 31


def _choose_width(total):
    """Largest lane-dense width (multiple of 128) dividing `total`, preferring
    widths that leave at least 8 rows so sublanes are fully used."""
    best = None
    for c in (4096, 2048, 1024, 512, 256, 128):
        if total % c == 0:
            if best is None:
                best = c
            if total // c >= 8:
                return c
    return best


def linear_dequantize(x, scale_x, scale_w):
    """Pallas implementation of LinearDequantizeModule.forward."""
    orig_shape = x.shape
    total = x.size

    # M_0 computed once here (not per grid step inside the kernel).
    m = 1.0 / (jnp.float32(scale_x) * jnp.float32(scale_w))
    m0 = jnp.round(m * jnp.float32(2.0 ** 31)).astype(jnp.int32).reshape(1)

    xf = x.reshape(-1).astype(jnp.int32)
    pad = (-total) % _LANE
    if pad:
        # Fallback only for sizes not divisible by 128; typical NCHW shapes
        # take the no-pad / no-slice path.
        xf = jnp.pad(xf, (0, pad))

    width = _choose_width(xf.size)
    rows = xf.size // width
    x2d = xf.reshape(rows, width)

    # ~2 MiB blocks; block_rows is a multiple of 8 or the full row extent.
    target_rows = max(8, (_TARGET_BLOCK_ELEMS // width) // 8 * 8)
    block_rows = rows if rows <= target_rows else target_rows
    grid = (pl.cdiv(rows, block_rows),)

    out2d = pl.pallas_call(
        _dequant_kernel,
        out_shape=jax.ShapeDtypeStruct((rows, width), jnp.int32),
        grid=grid,
        in_specs=[
            pl.BlockSpec(memory_space=pltpu.MemorySpace.SMEM),      # M_0 scalar
            pl.BlockSpec((block_rows, width), lambda i: (i, 0)),    # x tile
        ],
        out_specs=pl.BlockSpec((block_rows, width), lambda i: (i, 0)),
        input_output_aliases={1: 0},   # output reuses x's (reshaped) buffer
        compiler_params=pltpu.CompilerParams(
            dimension_semantics=("parallel",)
        ),
    )(m0, x2d)

    if pad:
        return out2d.reshape(-1)[:total].reshape(orig_shape)
    return out2d.reshape(orig_shape)


if __name__ == "__main__":
    key = jax.random.PRNGKey(0)
    # small NCHW "quantized accumulator" input
    x = jax.random.randint(
        key, (2, 4, 16, 16), minval=-128, maxval=128, dtype=jnp.int32
    )
    # deterministic scales chosen so that M * 2**31 fits in int32
    scale_x = jnp.float32(2.0)
    scale_w = jnp.float32(4.0)

    out = linear_dequantize(x, scale_x, scale_w)
    out = jax.block_until_ready(out)

    # pure-JAX reference of the same semantics
    M = 1.0 / (float(scale_x) * float(scale_w))
    M_0 = jnp.int32(round(M * 2 ** 31))
    ref = (x * M_0) << 31

    assert out.shape == x.shape and out.dtype == jnp.int32
    assert jnp.array_equal(out, ref), "mismatch vs reference"
    print("KERNEL_OK")
</pallas_src>

<mosaic_0001>
module attributes {stable_mosaic.version = 11 : i64} {
  func.func @_dequant_kernel(%arg0: i32, %arg1: memref<1xi32, #tpu.memory_space<smem>>, %arg2: memref<8x256xi32, #tpu.memory_space<vmem>>, %arg3: memref<8x256xi32, #tpu.memory_space<vmem>>) attributes {dimension_semantics = [#tpu.dimension_semantics<parallel>], iteration_bounds = array<i64: 1>, scalar_prefetch = 0 : i64, scratch_operands = 0 : i64, tpu.core_type = #tpu.core_type<tc>, window_params = [{transform_indices = @transform_0, window_bounds = array<i64: 1>}, {transform_indices = @transform_1, window_bounds = array<i64: 8, 256>}, {transform_indices = @transform_2, window_bounds = array<i64: 8, 256>}]} {
    %c0 = arith.constant 0 : index
    %c0_0 = arith.constant 0 : index
    %0 = vector.load %arg2[%c0, %c0_0] : memref<8x256xi32, #tpu.memory_space<vmem>>, vector<8x256xi32>
    %c0_1 = arith.constant 0 : index
    %1 = memref.load %arg1[%c0_1] : memref<1xi32, #tpu.memory_space<smem>>
    %2 = vector.broadcast %1 : i32 to vector<8x256xi32>
    %3 = arith.muli %0, %2 : vector<8x256xi32>
    %c31_i32 = arith.constant 31 : i32
    %4 = vector.broadcast %c31_i32 : i32 to vector<8x256xi32>
    %5 = arith.shli %3, %4 : vector<8x256xi32>
    %c0_2 = arith.constant 0 : index
    %c0_3 = arith.constant 0 : index
    %6 = vector.load %arg3[%c0_2, %c0_3] : memref<8x256xi32, #tpu.memory_space<vmem>>, vector<8x256xi32>
    tpu.vector_store %arg3[%c0_2, %c0_3], %5 {strides = array<i32>} : memref<8x256xi32, #tpu.memory_space<vmem>>, vector<8x256xi32>,
    return
  }
  func.func @transform_0(%arg0: i32) -> i32 {
    %c0_i32 = arith.constant 0 : i32
    %c0_i32_0 = arith.constant 0 : i32
    return %c0_i32 : i32
  }
  func.func @transform_1(%arg0: i32) -> (i32, i32) {
    %c0_i32 = arith.constant 0 : i32
    %c0_i32_0 = arith.constant 0 : i32
    return %arg0, %c0_i32 : i32, i32
  }
  func.func @transform_2(%arg0: i32) -> (i32, i32) {
    %c0_i32 = arith.constant 0 : i32
    %c0_i32_0 = arith.constant 0 : i32
    return %arg0, %c0_i32 : i32, i32
  }
}

</mosaic_0001>

<bundles_post_ra>
// kernel: tpu_custom_call.1
= control target key start
LH: loop header
LB: loop body
LE: loop exit
PB: predicated region body
PF: predicated region fallthrough
CT: control target
= control target key end

     0   :  { %8 = vsyncpa [#allocation4], 0  ;;  %s134_s0 = inlined_call_operand.<no memory space> [shape: s32[1], index: 0, kind: input, shape index: {}]   ;;  %s135_s1 = inlined_call_operand.hbm [shape: s32[8,256], index: 1, kind: input, shape index: {}, may-alias: {1,2}]   ;;  %s136_s2 = inlined_call_operand.hbm [shape: s32[8,256], index: 2, kind: output, shape index: {}, may-alias: {1,2}]  }
   0x1   :  { %9 = vsyncpa [#allocation5], 0  ;;  %s17_s11 = sshll.u32 %s135_s1, 4  ;;  %s108_s12 = smov [#allocation3]   ;;  %s18_s11 = int_to_ptr.hbm [resolvable:$true] %s17_s11 }
   0x2   :  { %s19_s13 = sshll.u32 %s108_s12, 4  ;;  %s20_s13 = int_to_ptr.vmem [resolvable:$true] %s19_s13 }
   0x3   :  { %22 = dma.hbm_to_vmem [thread:$0]  %s18_s11, 256, %s20_s13, [#allocation4]  }
   0x4   :  { %104 = dma.done.wait [#allocation4], 256  }
   0x5   :  { %105 = vsyncadd [#allocation4], 4294967040  ;;  %v30_v0 = vstv %s134_s0  ;;  %v27_v1 = vld [vmem:[#allocation3] sm:$0xff]  ;;  %v28_v2 = vld [vmem:[#allocation3 + $0x8] sm:$0xff]  ;;  %s109_s16 = smov [#allocation6]   ;;  %s44_s1 = sshll.u32 %s136_s2, 4  ;;  %s45_s1 = int_to_ptr.hbm [resolvable:$true] %s44_s1 }
   0x6   :  { %v31_v3 = vmul.u32 %v30_v0, %v27_v1  ;;  %v32_v4 = vmul.u32 %v30_v0, %v28_v2  ;;  %s42_s17 = sshll.u32 %s109_s16, 4  ;;  %s43_s17 = int_to_ptr.vmem [resolvable:$true] %s42_s17 }
   0x8   :  { %v33_v5 = vshll.u32 %v31_v3, 31  ;;  %v34_v6 = vshll.u32 %v32_v4, 31 }
   0xa   :  { %35 = vst [vmem:[#allocation6] sm:$0xff] %v33_v5 }
   0xb   :  { %36 = vst [vmem:[#allocation6 + $0x8] sm:$0xff] %v34_v6 }
   0xc   :  { %47 = dma.vmem_to_hbm [thread:$0]  %s43_s17, 256, %s45_s1, [#allocation5]  }
   0xd   :  { %106 = dma.done.wait [#allocation5], 256  }
   0xe   :  { %107 = vsyncadd [#allocation5], 4294967040 }
   0xf   :  { %52 = vsyncpa [#allocation4], 1 }
  0x10   :  { %53 = vsyncpa [#allocation5], 1 }

</bundles_post_ra>
